<compile_context>
chip_gen: v5e
topology: v5e:2x2
jax: 0.10.0
libtpu: 0.0.40
codegen_flags: <defaults>
</compile_context>

<pallas_src>
import jax
import jax.numpy as jnp
from jax.experimental import pallas as pl
from jax.experimental.pallas import tpu as pltpu

LANE = 128
SUBLANE = 8


def _round_up(x, m):
    return ((x + m - 1) // m) * m


# ----------------------------- Pallas kernel --------------------------------
def _distance_points_kernel(d_ref, pc_ref, out_ref, acc_ref):
    """d_ref  : (B, 12) f32 scalar-prefetch (SMEM), rows of D = inv(RT_total) - [I|0]
    pc_ref : (1, 4, TILE_SUB, 128) VMEM block of the re-laid-out point cloud
    out_ref: (1, 1, 128)  per-batch per-lane partial sums (written at finalize only)
    acc_ref: (TILE_SUB, 128) f32 VMEM scratch, running per-lane sum of distances
    """
    b = pl.program_id(0)
    k = pl.program_id(1)

    @pl.when(k == 0)
    def _init():
        acc_ref[...] = jnp.zeros_like(acc_ref)

    x = pc_ref[0, 0]          # (TILE_SUB, 128) fully packed vregs
    y = pc_ref[0, 1]
    z = pc_ref[0, 2]
    w = pc_ref[0, 3]          # == 1 for real points, == 0 for padding

    # rows 0..2 of (M - I) @ p == M @ p - p   (row 3 is exactly 0 for rigid M)
    r0 = d_ref[b, 0] * x + d_ref[b, 1] * y + d_ref[b, 2] * z + d_ref[b, 3] * w
    r1 = d_ref[b, 4] * x + d_ref[b, 5] * y + d_ref[b, 6] * z + d_ref[b, 7] * w
    r2 = d_ref[b, 8] * x + d_ref[b, 9] * y + d_ref[b, 10] * z + d_ref[b, 11] * w

    # NOTE: reference calls error.clamp(100.0) but discards the result -> no-op.
    acc_ref[...] = acc_ref[...] + jnp.sqrt(r0 * r0 + r1 * r1 + r2 * r2)

    @pl.when(k == pl.num_programs(1) - 1)
    def _finalize():
        # one cross-sublane reduce per batch element; cross-lane reduce is done outside
        out_ref[0] = jnp.sum(acc_ref[...], axis=0, keepdims=True)


# ------------------------------ JAX glue -------------------------------------
def _quat_to_rot3(q):
    """q = [w, x, y, z] (unnormalized) -> 3x3 rotation matrix (matches CMRNet quat2mat)."""
    q = q / jnp.linalg.norm(q)
    w, x, y, z = q[0], q[1], q[2], q[3]
    row0 = jnp.stack([1 - 2 * y * y - 2 * z * z, 2 * x * y - 2 * z * w, 2 * x * z + 2 * y * w])
    row1 = jnp.stack([2 * x * y + 2 * z * w, 1 - 2 * x * x - 2 * z * z, 2 * y * z - 2 * x * w])
    row2 = jnp.stack([2 * x * z - 2 * y * w, 2 * y * z + 2 * x * w, 1 - 2 * x * x - 2 * y * y])
    return jnp.stack([row0, row1, row2])


def _make_D(tt, tr, te, re_):
    """D (flattened 3x4) with  D @ [p;1] = inv(RT_total) @ [p;1] - [p;1]  (rows 0..2).

    inv(RT_total) = inv(RT_pred) @ RT_target = [Rp^T Rt | Rp^T (tt - te); 0 1]
    (analytic rigid inverse: exact [0,0,0,1] last row, more stable than linalg.inv).
    """
    R_t = _quat_to_rot3(tr)
    R_p = _quat_to_rot3(re_)
    Rm = R_p.T @ R_t
    tm = R_p.T @ (tt - te)
    D = jnp.concatenate([Rm - jnp.eye(3, dtype=Rm.dtype), tm[:, None]], axis=1)  # (3, 4)
    return jnp.reshape(D, (12,))


def distance_points_3d(point_clouds, target_transl, target_rot, transl_err, rot_err,
                       *, tile_n=16384):
    """point_clouds: (B, 4, N) homogeneous GT-frame point clouds. Returns shape (1,)."""
    pc = point_clouds.astype(jnp.float32)
    B, four, N = pc.shape
    assert four == 4

    # ---- point-axis tiling / padding (pads contribute 0 because w == 0) ----
    tile_sub = max(SUBLANE, (int(tile_n) // LANE) // SUBLANE * SUBLANE)
    sub_needed = _round_up(-(-N // LANE), SUBLANE)
    tile_sub = min(tile_sub, sub_needed)
    sub_padded = _round_up(sub_needed, tile_sub)
    n_pad = sub_padded * LANE
    if n_pad != N:
        pc = jnp.pad(pc, ((0, 0), (0, 0), (0, n_pad - N)))
    pc4 = pc.reshape(B, 4, sub_padded, LANE)
    num_tiles = sub_padded // tile_sub

    # ---- tiny 4x4 algebra stays in plain JAX ----
    D = jax.vmap(_make_D)(
        target_transl.astype(jnp.float32),
        target_rot.astype(jnp.float32),
        transl_err.astype(jnp.float32),
        rot_err.astype(jnp.float32),
    )  # (B, 12)

    partials = pl.pallas_call(
        _distance_points_kernel,
        out_shape=jax.ShapeDtypeStruct((B, 1, LANE), jnp.float32),
        grid_spec=pltpu.PrefetchScalarGridSpec(
            num_scalar_prefetch=1,                      # D -> SMEM scalars
            grid=(B, num_tiles),
            in_specs=[
                pl.BlockSpec((1, 4, tile_sub, LANE), lambda b, k, d: (b, 0, k, 0)),
            ],
            out_specs=pl.BlockSpec((1, 1, LANE), lambda b, k, d: (b, 0, 0)),
            scratch_shapes=[pltpu.VMEM((tile_sub, LANE), jnp.float32)],
        ),
        compiler_params=pltpu.CompilerParams(
            dimension_semantics=("parallel", "arbitrary")),
    )(D, pc4)

    # sum over lanes and batch, then scale: sum_b mean_b(err) / B == sum_all / (N*B)
    return (jnp.sum(partials) / jnp.float32(N * B)).reshape(1)


# Pure-JAX reference (mirrors the PyTorch math, uses explicit matrix inverses).
def _rt(t, q):
    M = jnp.eye(4, dtype=jnp.float32)
    M = M.at[:3, :3].set(_quat_to_rot3(q)).at[:3, 3].set(t)
    return M


def _reference(point_clouds, target_transl, target_rot, transl_err, rot_err):
    def one(tt, tr, te, re_):
        RT_target = _rt(tt, tr)
        RT_pred = _rt(te, re_)
        RT_total = jnp.linalg.inv(RT_target) @ RT_pred
        return jnp.linalg.inv(RT_total)

    M = jax.vmap(one)(target_transl.astype(jnp.float32), target_rot.astype(jnp.float32),
                      transl_err.astype(jnp.float32), rot_err.astype(jnp.float32))
    pc = point_clouds.astype(jnp.float32)
    out = jnp.einsum("bij,bjn->bin", M, pc)
    err = jnp.sqrt(jnp.sum((out - pc) ** 2, axis=1))          # (B, N)
    return (jnp.sum(jnp.mean(err, axis=1)) / target_transl.shape[0]).reshape(1)


if __name__ == "__main__":
    key = jax.random.PRNGKey(0)
    B, N = 2, 2500            # N deliberately not a multiple of the tile -> exercises padding

    k1, k2, k3, k4, k5 = jax.random.split(key, 5)
    xyz = jax.random.normal(k1, (B, 3, N), dtype=jnp.float32) * 5.0
    ones = jnp.ones((B, 1, N), dtype=jnp.float32)
    point_clouds = jnp.concatenate([xyz, ones], axis=1)        # (B, 4, N) homogeneous

    target_transl = jax.random.normal(k2, (B, 3), dtype=jnp.float32) * 0.5
    target_rot = jax.random.normal(k3, (B, 4), dtype=jnp.float32) + jnp.array([2.0, 0.0, 0.0, 0.0], jnp.float32)
    transl_err = jax.random.normal(k4, (B, 3), dtype=jnp.float32) * 0.5
    rot_err = jax.random.normal(k5, (B, 4), dtype=jnp.float32) + jnp.array([2.0, 0.0, 0.0, 0.0], jnp.float32)

    # small tile to exercise the multi-tile reduction path (3 tiles of 1024 points)
    loss = distance_points_3d(point_clouds, target_transl, target_rot,
                              transl_err, rot_err, tile_n=1024)
    loss = jax.block_until_ready(loss)

    ref = jax.block_until_ready(
        _reference(point_clouds, target_transl, target_rot, transl_err, rot_err))

    assert loss.shape == (1,), loss.shape
    assert jnp.allclose(loss, ref, rtol=1e-3, atol=1e-3), (loss, ref)

    print("KERNEL_OK")
</pallas_src>

<mosaic_0001>
module attributes {stable_mosaic.version = 11 : i64} {
  func.func @_distance_points_kernel(%arg0: i32, %arg1: i32, %arg2: memref<2x12xf32, #tpu.memory_space<smem>>, %arg3: memref<1x4x8x128xf32, #tpu.memory_space<vmem>>, %arg4: memref<1x1x128xf32, #tpu.memory_space<vmem>>, %arg5: memref<8x128xf32, #tpu.memory_space<vmem>>) attributes {dimension_semantics = [#tpu.dimension_semantics<parallel>, #tpu.dimension_semantics<arbitrary>], iteration_bounds = array<i64: 2, 3>, scalar_prefetch = 1 : i64, scratch_operands = 1 : i64, tpu.core_type = #tpu.core_type<tc>, window_params = [{transform_indices = @transform_0, window_bounds = array<i64: 1, 4, 8, 128>}, {transform_indices = @transform_1, window_bounds = array<i64: 1, 1, 128>}]} {
    %c0_i32 = arith.constant 0 : i32
    %0 = arith.cmpi eq, %arg1, %c0_i32 : i32
    %1 = arith.extui %0 : i1 to i32
    %c0_i32_0 = arith.constant 0 : i32
    %2 = arith.cmpi ne, %1, %c0_i32_0 : i32
    scf.if %2 {
      %cst = arith.constant 0.000000e+00 : f32
      %80 = vector.broadcast %cst : f32 to vector<8x128xf32>
      %c0_22 = arith.constant 0 : index
      %c0_23 = arith.constant 0 : index
      %81 = vector.load %arg5[%c0_22, %c0_23] : memref<8x128xf32, #tpu.memory_space<vmem>>, vector<8x128xf32>
      tpu.vector_store %arg5[%c0_22, %c0_23], %80 {strides = array<i32>} : memref<8x128xf32, #tpu.memory_space<vmem>>, vector<8x128xf32>,
    } else {
    }
    %c0 = arith.constant 0 : index
    %c0_1 = arith.constant 0 : index
    %c0_2 = arith.constant 0 : index
    %c0_3 = arith.constant 0 : index
    %3 = vector.load %arg3[%c0, %c0_1, %c0_2, %c0_3] : memref<1x4x8x128xf32, #tpu.memory_space<vmem>>, vector<1x1x8x128xf32>
    %4 = vector.shape_cast %3 : vector<1x1x8x128xf32> to vector<8x128xf32>
    %c0_4 = arith.constant 0 : index
    %c1 = arith.constant 1 : index
    %c0_5 = arith.constant 0 : index
    %c0_6 = arith.constant 0 : index
    %5 = vector.load %arg3[%c0_4, %c1, %c0_5, %c0_6] : memref<1x4x8x128xf32, #tpu.memory_space<vmem>>, vector<1x1x8x128xf32>
    %6 = vector.shape_cast %5 : vector<1x1x8x128xf32> to vector<8x128xf32>
    %c0_7 = arith.constant 0 : index
    %c2 = arith.constant 2 : index
    %c0_8 = arith.constant 0 : index
    %c0_9 = arith.constant 0 : index
    %7 = vector.load %arg3[%c0_7, %c2, %c0_8, %c0_9] : memref<1x4x8x128xf32, #tpu.memory_space<vmem>>, vector<1x1x8x128xf32>
    %8 = vector.shape_cast %7 : vector<1x1x8x128xf32> to vector<8x128xf32>
    %c0_10 = arith.constant 0 : index
    %c3 = arith.constant 3 : index
    %c0_11 = arith.constant 0 : index
    %c0_12 = arith.constant 0 : index
    %9 = vector.load %arg3[%c0_10, %c3, %c0_11, %c0_12] : memref<1x4x8x128xf32, #tpu.memory_space<vmem>>, vector<1x1x8x128xf32>
    %10 = vector.shape_cast %9 : vector<1x1x8x128xf32> to vector<8x128xf32>
    %11 = arith.index_cast %arg0 : i32 to index
    %c0_13 = arith.constant 0 : index
    %12 = memref.load %arg2[%11, %c0_13] : memref<2x12xf32, #tpu.memory_space<smem>>
    %13 = vector.broadcast %12 : f32 to vector<8x128xf32>
    %14 = arith.mulf %13, %4 : vector<8x128xf32>
    %15 = arith.index_cast %arg0 : i32 to index
    %c1_14 = arith.constant 1 : index
    %16 = memref.load %arg2[%15, %c1_14] : memref<2x12xf32, #tpu.memory_space<smem>>
    %17 = vector.broadcast %16 : f32 to vector<8x128xf32>
    %18 = arith.mulf %17, %6 : vector<8x128xf32>
    %19 = arith.addf %14, %18 : vector<8x128xf32>
    %20 = arith.index_cast %arg0 : i32 to index
    %c2_15 = arith.constant 2 : index
    %21 = memref.load %arg2[%20, %c2_15] : memref<2x12xf32, #tpu.memory_space<smem>>
    %22 = vector.broadcast %21 : f32 to vector<8x128xf32>
    %23 = arith.mulf %22, %8 : vector<8x128xf32>
    %24 = arith.addf %19, %23 : vector<8x128xf32>
    %25 = arith.index_cast %arg0 : i32 to index
    %c3_16 = arith.constant 3 : index
    %26 = memref.load %arg2[%25, %c3_16] : memref<2x12xf32, #tpu.memory_space<smem>>
    %27 = vector.broadcast %26 : f32 to vector<8x128xf32>
    %28 = arith.mulf %27, %10 : vector<8x128xf32>
    %29 = arith.addf %24, %28 : vector<8x128xf32>
    %30 = arith.index_cast %arg0 : i32 to index
    %c4 = arith.constant 4 : index
    %31 = memref.load %arg2[%30, %c4] : memref<2x12xf32, #tpu.memory_space<smem>>
    %32 = vector.broadcast %31 : f32 to vector<8x128xf32>
    %33 = arith.mulf %32, %4 : vector<8x128xf32>
    %34 = arith.index_cast %arg0 : i32 to index
    %c5 = arith.constant 5 : index
    %35 = memref.load %arg2[%34, %c5] : memref<2x12xf32, #tpu.memory_space<smem>>
    %36 = vector.broadcast %35 : f32 to vector<8x128xf32>
    %37 = arith.mulf %36, %6 : vector<8x128xf32>
    %38 = arith.addf %33, %37 : vector<8x128xf32>
    %39 = arith.index_cast %arg0 : i32 to index
    %c6 = arith.constant 6 : index
    %40 = memref.load %arg2[%39, %c6] : memref<2x12xf32, #tpu.memory_space<smem>>
    %41 = vector.broadcast %40 : f32 to vector<8x128xf32>
    %42 = arith.mulf %41, %8 : vector<8x128xf32>
    %43 = arith.addf %38, %42 : vector<8x128xf32>
    %44 = arith.index_cast %arg0 : i32 to index
    %c7 = arith.constant 7 : index
    %45 = memref.load %arg2[%44, %c7] : memref<2x12xf32, #tpu.memory_space<smem>>
    %46 = vector.broadcast %45 : f32 to vector<8x128xf32>
    %47 = arith.mulf %46, %10 : vector<8x128xf32>
    %48 = arith.addf %43, %47 : vector<8x128xf32>
    %49 = arith.index_cast %arg0 : i32 to index
    %c8 = arith.constant 8 : index
    %50 = memref.load %arg2[%49, %c8] : memref<2x12xf32, #tpu.memory_space<smem>>
    %51 = vector.broadcast %50 : f32 to vector<8x128xf32>
    %52 = arith.mulf %51, %4 : vector<8x128xf32>
    %53 = arith.index_cast %arg0 : i32 to index
    %c9 = arith.constant 9 : index
    %54 = memref.load %arg2[%53, %c9] : memref<2x12xf32, #tpu.memory_space<smem>>
    %55 = vector.broadcast %54 : f32 to vector<8x128xf32>
    %56 = arith.mulf %55, %6 : vector<8x128xf32>
    %57 = arith.addf %52, %56 : vector<8x128xf32>
    %58 = arith.index_cast %arg0 : i32 to index
    %c10 = arith.constant 10 : index
    %59 = memref.load %arg2[%58, %c10] : memref<2x12xf32, #tpu.memory_space<smem>>
    %60 = vector.broadcast %59 : f32 to vector<8x128xf32>
    %61 = arith.mulf %60, %8 : vector<8x128xf32>
    %62 = arith.addf %57, %61 : vector<8x128xf32>
    %63 = arith.index_cast %arg0 : i32 to index
    %c11 = arith.constant 11 : index
    %64 = memref.load %arg2[%63, %c11] : memref<2x12xf32, #tpu.memory_space<smem>>
    %65 = vector.broadcast %64 : f32 to vector<8x128xf32>
    %66 = arith.mulf %65, %10 : vector<8x128xf32>
    %67 = arith.addf %62, %66 : vector<8x128xf32>
    %c0_17 = arith.constant 0 : index
    %c0_18 = arith.constant 0 : index
    %68 = vector.load %arg5[%c0_17, %c0_18] : memref<8x128xf32, #tpu.memory_space<vmem>>, vector<8x128xf32>
    %69 = arith.mulf %29, %29 : vector<8x128xf32>
    %70 = arith.mulf %48, %48 : vector<8x128xf32>
    %71 = arith.addf %69, %70 : vector<8x128xf32>
    %72 = arith.mulf %67, %67 : vector<8x128xf32>
    %73 = arith.addf %71, %72 : vector<8x128xf32>
    %74 = math.sqrt %73 : vector<8x128xf32>
    %75 = arith.addf %68, %74 : vector<8x128xf32>
    %c0_19 = arith.constant 0 : index
    %c0_20 = arith.constant 0 : index
    %76 = vector.load %arg5[%c0_19, %c0_20] : memref<8x128xf32, #tpu.memory_space<vmem>>, vector<8x128xf32>
    tpu.vector_store %arg5[%c0_19, %c0_20], %75 {strides = array<i32>} : memref<8x128xf32, #tpu.memory_space<vmem>>, vector<8x128xf32>,
    %c2_i32 = arith.constant 2 : i32
    %77 = arith.cmpi eq, %arg1, %c2_i32 : i32
    %78 = arith.extui %77 : i1 to i32
    %c0_i32_21 = arith.constant 0 : i32
    %79 = arith.cmpi ne, %78, %c0_i32_21 : i32
    scf.if %79 {
      %c0_22 = arith.constant 0 : index
      %c0_23 = arith.constant 0 : index
      %80 = vector.load %arg5[%c0_22, %c0_23] : memref<8x128xf32, #tpu.memory_space<vmem>>, vector<8x128xf32>
      %cst = arith.constant dense<0.000000e+00> : vector<128xf32>
      %81 = vector.multi_reduction <add>, %80, %cst [0] : vector<8x128xf32> to vector<128xf32>
      %82 = vector.shape_cast %81 : vector<128xf32> to vector<1x128xf32>
      %c0_24 = arith.constant 0 : index
      %c0_25 = arith.constant 0 : index
      %c0_26 = arith.constant 0 : index
      %83 = vector.load %arg4[%c0_24, %c0_25, %c0_26] : memref<1x1x128xf32, #tpu.memory_space<vmem>>, vector<1x1x128xf32>
      %84 = vector.shape_cast %83 : vector<1x1x128xf32> to vector<1x128xf32>
      %85 = vector.shape_cast %82 : vector<1x128xf32> to vector<1x1x128xf32>
      tpu.vector_store %arg4[%c0_24, %c0_25, %c0_26], %85 {strides = array<i32>} : memref<1x1x128xf32, #tpu.memory_space<vmem>>, vector<1x1x128xf32>,
    } else {
    }
    return
  }
  func.func @transform_0(%arg0: i32, %arg1: i32, %arg2: memref<2x12xf32, #tpu.memory_space<smem>>) -> (i32, i32, i32, i32) {
    %c0_i32 = arith.constant 0 : i32
    %c0_i32_0 = arith.constant 0 : i32
    %c0_i32_1 = arith.constant 0 : i32
    return %arg0, %c0_i32, %arg1, %c0_i32_0 : i32, i32, i32, i32
  }
  func.func @transform_1(%arg0: i32, %arg1: i32, %arg2: memref<2x12xf32, #tpu.memory_space<smem>>) -> (i32, i32, i32) {
    %c0_i32 = arith.constant 0 : i32
    %c0_i32_0 = arith.constant 0 : i32
    %c0_i32_1 = arith.constant 0 : i32
    return %arg0, %c0_i32, %c0_i32_0 : i32, i32, i32
  }
}

</mosaic_0001>

<bundles_post_ra>
// kernel: tpu_custom_call.1
= control target key start
LH: loop header
LB: loop body
LE: loop exit
PB: predicated region body
PF: predicated region fallthrough
CT: control target
= control target key end

     0   :  { %s647_s12 = smov [#allocation4]   ;;  %s861_s0 = inlined_call_operand.hbm [shape: f32[2,12], index: 0, kind: input, shape index: {}]   ;;  %s862_s1 = inlined_call_operand.hbm [shape: f32[2,4,24,128], index: 1, kind: input, shape index: {}]   ;;  %s863_s2 = inlined_call_operand.hbm [shape: f32[2,1,128], index: 2, kind: output, shape index: {}]  }
   0x1   :  { %868 = sst [smem:[#allocation16_spill]] %s862_s1  ;;  %s8_s11 = sshll.u32 %s861_s0, 4  ;;  %s9_s11 = int_to_ptr.hbm [resolvable:$true] %s8_s11 }
   0x2   :  { %11 = dma.hbm_to_smem %s9_s11, 32, %s647_s12, [#allocation3] }
   0x3   :  { %593 = dma.done.wait [#allocation3], 32 }
   0x4   :  { %594 = vsyncadd [#allocation3], 4294967264 }
   0x5   :  { %14 = sfence }
   0x6   :  { %15 = vsyncpa [#allocation6], 0 }
   0x7   :  { %17 = vsyncpa [#allocation6 + $0x1], 0 }
   0x8   :  { %18 = vsyncpa [#allocation7], 0 }
   0x9   :  { %20 = vsyncpa [#allocation7 + $0x1], 0  ;;  %s670_s13 = smov 0   ;;  %s672_s14 = smov 0  }
   0xa   :  { %s674_s15 = smov 0   ;;  %s676_s16 = smov 0  }
   0xb   :  { %s678_s17 = smov 0   ;;  %s680_s0 = smov 0  }
   0xc   :  { %s682_s18 = smov 0   ;;  %s684_s19 = smov 0  }
   0xd   :  { %s686_s20 = smov 0   ;;  %s688_s21 = smov 0  }
   0xe   :  { %s690_s22 = smov 0  }
   0xf LB: > { %869 = sst [smem:[#allocation12_spill]] %s625_s0  ;;  %s353_s23 = sadd.s32 4294967295, %s645_s22   ;;  %s645_s22 = sphi %s690_s22, %s26_s22   ;;  %s641_s21 = sphi %s688_s21, %s891_s21   ;;  %s637_s20 = sphi %s686_s20, %s890_s20   ;;  %s633_s19 = sphi %s684_s19, %s889_s19   ;;  %s629_s18 = sphi %s682_s18, %s888_s18   ;;  %s625_s0 = sphi %s680_s0, %s880_s0   ;;  %s621_s17 = sphi %s678_s17, %s887_s17   ;;  %s617_s16 = sphi %s676_s16, %s886_s16   ;;  %s613_s15 = sphi %s674_s15, %s885_s15   ;;  %s609_s14 = sphi %s672_s14, %s884_s14   ;;  %s605_s13 = sphi %s670_s13, %s883_s13  }
  0x10   : > { %s354_s24 = sadd.s32 4294967294, %s645_s22   ;;  %s35_s25 = sadd.s32 1, %s637_s20 }
  0x11   : > { %s38_s26 = sadd.s32 1, %s641_s21  ;;  %p36_p0 = scmp.ge.s32.totalorder %s35_s25, 3 }
  0x12   : > { %s47_s27 = sadd.s32 1, %s625_s0  ;;  %p54_p1 = scmp.ne.s32.totalorder %s625_s0, %s621_s17 }
  0x13   : > { %p55_p2 = scmp.eq.s32.totalorder %s645_s22, 0  ;;  %s893_s25 = smov (%p36_p0, %s35_s25), 0 }
  0x14   : > { %870 = sst [smem:[#allocation13_spill]] %s893_s25  ;;  %s895_s26 = smov (!%p36_p0, %s38_s26), %s641_s21 }
  0x15   : > { %s43_s28 = ssub.s32 %s637_s20, %s893_s25  ;;  %p736_p3 = por %p55_p2, %p54_p1 }
  0x16   : > { %p40_p4 = scmp.ge.s32.totalorder %s895_s26, 2  ;;  %p60_p5 = scmp.ne.s32.totalorder %s621_s17, %s617_s16 }
  0x17   : > { %p61_p6 = scmp.eq.s32.totalorder %s353_s23, 0  ;;  %s73_s30 = sadd.s32 1, %s613_s15 }
  0x18   : > { %s897_s26 = smov (%p40_p4, %s895_s26), 0  ;;  %p83_p8 = scmp.ne.s32.totalorder %s613_s15, %s609_s14 }
  0x19   : > { %872 = sst [smem:[#allocation14_spill]] %s897_s26  ;;  %p744_p7 = por %p61_p6, %p60_p5 }
  0x1a   : > { %s42_s4 = ssub.s32 %s641_s21, %s897_s26  ;;  %p84_p9 = scmp.eq.s32.totalorder %s353_s23, 5 }
  0x1b   : > { %s44_s5 = sor.u32 %s43_s28, %s42_s4  ;;  %p71_p10 = scmp.eq.s32.totalorder %s42_s4, 0 }
  0x1c   : > { %p45_p11 = scmp.eq.s32.totalorder %s44_s5, 0  ;;  %p752_p12 = por %p84_p9, %p83_p8 }
  0x1d   : > { %s757_s7 = scalar_select %p71_p10, %s613_s15, %s73_s30  }
  0x1e   : > { %s760_s8 = scalar_select %p45_p11, %s625_s0, %s47_s27  }
  0x1f   : > { %p89_p13 = scmp.ne.s32.totalorder %s609_s14, %s605_s13  ;;  %p90_p0 = scmp.eq.s32.totalorder %s354_s24, 5 }
  0x20   : > { %875 = sst [smem:[#allocation15_spill]] %s760_s8  ;;  %p382_p1 = scmp.lt.s32.totalorder %s645_s22, 6 }
  0x21   : > { %p765_p2 = por %p90_p0, %p89_p13  ;;  %s110_s10 = sand.u32 1, %s625_s0  }
  0x22   : > { %s357_s11 = sshll.u32 %s110_s10, 5  ;;  %s369_s12 = smul.u32 12, %s641_s21 }
  0x23   : > { %s114_s16 = scalar_lea.vmem [#allocation5], %s357_s11  ;;  %p375_p4 = pnand %p382_p1, %p736_p3 }
  0x24   : > { %s123_s23 = sshll.u32 %s114_s16, 4  ;;  %s118_s28 = sadd.s32 %s637_s20, %s369_s12  ;;  %s124_s23 = int_to_ptr.vmem [resolvable:$true] %s123_s23 }
  0x25   : > { %s358_s27 = sshll.u32 %s118_s28, 3  ;;  %s877_s1 = sld [smem:[#allocation16_spill]] }
  0x26   : > { %s111_s26 = scalar_lea.sflag [#allocation6], %s110_s10  ;;  %s648_s25 = smov 384  }
  0x27   : > { %s649_s8 = smov 128   ;;  %s650_s0 = smov 8  }
  0x28   : > { %p359_p5 = scmp.ge.s32.totalorder %s645_s22, 1  ;;  %p131_p6 = scmp.lt.s32.totalorder %s645_s22, 7 }
  0x2a   : > { %p132_p8 = pnand %p359_p5, %p131_p6 }
  0x2b   : > { %s120_s24 = scalar_lea.hbm %s877_s1, %s358_s27  ;;  %s137_s29 = sand.u32 (!%p132_p8), 1, %s621_s17  }
  0x2c   : > { %s121_s5 = sshll.u32 %s120_s24, 4  ;;  %135 = sbr.rel (%p132_p8) target bundleno = 146 (0x92), region = 24  ;;  %s122_s5 = int_to_ptr.hbm [resolvable:$true] %s121_s5 }
  0x2d   : > { %377 = dma.hbm_to_vmem [thread:$0]  (!%p375_p4), %s122_s5, 512, %s124_s23, %s111_s26, %s648_s25, %s649_s8, %s650_s0  }
  0x2e   : > { %s360_s11 = sshll.u32 (!%p132_p8), %s137_s29, 5  ;;  %s138_s12 = scalar_lea.sflag (!%p132_p8), [#allocation6], %s137_s29 }
  0x2f   : > { %s141_s16 = scalar_lea.vmem (!%p132_p8), [#allocation5], %s360_s11 }
  0x31   : > { %596 = dma.done.wait (%p744_p7), %s138_s12, 512  }
  0x32   : > { %598 = vsyncadd (%p744_p7), %s138_s12, 4294966784  ;;  %s867_s10 = sand.u32 1, %s609_s14   ;;  %p361_p3 = scmp.ne.s32.totalorder %s629_s18, 0 }
  0x33   : > { %s787_s0 = scalar_lea.vmem [#allocation8], %s867_s10 }
  0x34   : > { %163 = sbr.rel (%p361_p3) target bundleno = 59 (0x3b), region = 32 }
  0x39   : > { %v651_v0 = vmov 0.0  }
  0x3a   : > { %164 = vst [vmem:[#allocation2] sm:$0xff] %v651_v0 }
  0x3b PF: > { %s791_s25 = sshll.u32 %s633_s19, 7  ;;  %v165_v1 = vld [vmem:[%s141_s16] sm:$0xff]  ;;  %v362_v2 = vld [vmem:[%s141_s16 + $0x8] sm:$0xff]  ;;  %v363_v3 = vld [vmem:[%s141_s16 + $0x10] sm:$0xff]  ;;  %p366_p7 = scmp.ne.s32.totalorder %s629_s18, 2 }
  0x3c   : > { %s173_s26 = sld [smem:[#allocation4 + %s791_s25]]  ;;  %s176_s3 = sadd.s32 1, %s791_s25  ;;  %v364_v5 = vld [vmem:[%s141_s16 + $0x18] sm:$0xff] }
  0x3d   : > { %s177_s8 = sld [smem:[#allocation4 + %s176_s3]]  ;;  %s181_s23 = sadd.s32 2, %s791_s25 }
  0x3e   : > { %s182_s28 = sld [smem:[#allocation4 + %s181_s23]]  ;;  %s186_s27 = sadd.s32 3, %s791_s25 }
  0x3f   : > { %s187_s30 = sld [smem:[#allocation4 + %s186_s27]]  ;;  %s191_s4 = sadd.s32 4, %s791_s25 }
  0x40   : > { %s192_s24 = sld [smem:[#allocation4 + %s191_s4]]  ;;  %s195_s5 = sadd.s32 5, %s791_s25 }
  0x41   : > { %s196_s29 = sld [smem:[#allocation4 + %s195_s5]]  ;;  %s200_s11 = sadd.s32 6, %s791_s25  ;;  %v229_v51 = vld [vmem:[#allocation2] sm:$0xff] }
  0x42   : > { %v174_v4 = vstv %s173_s26  ;;  %s201_s12 = sld [smem:[#allocation4 + %s200_s11]]  ;;  %s205_s10 = sadd.s32 7, %s791_s25 }
  0x43   : > { %v175_v6 = vmul.f32 %v174_v4, %v165_v1  ;;  %v178_v7 = vstv %s177_s8  ;;  %s206_s3 = sld [smem:[#allocation4 + %s205_s10]]  ;;  %s210_s23 = sadd.s32 8, %s791_s25 }
  0x44   : > { %v179_v8 = vmul.f32 %v362_v2, %v178_v7  ;;  %v183_v9 = vstv %s182_s28  ;;  %s211_s27 = sld [smem:[#allocation4 + %s210_s23]]  ;;  %s214_s4 = sadd.s32 9, %s791_s25 }
  0x45   : > { %v184_v10 = vmul.f32 %v363_v3, %v183_v9  ;;  %v188_v11 = vstv %s187_s30  ;;  %s215_s1 = sld [smem:[#allocation4 + %s214_s4]]  ;;  %s219_s5 = sadd.s32 10, %s791_s25 }
  0x46   : > { %v180_v12 = vadd.f32 %v179_v8, %v175_v6  ;;  %v189_v13 = vmul.f32 %v364_v5, %v188_v11  ;;  %v193_v14 = vstv %s192_s24  ;;  %s220_s26 = sld [smem:[#allocation4 + %s219_s5]]  ;;  %s224_s11 = sadd.s32 11, %s791_s25 }
  0x47   : > { %v194_v15 = vmul.f32 %v193_v14, %v165_v1  ;;  %v197_v16 = vstv %s196_s29  ;;  %s225_s16 = sld [smem:[#allocation4 + %s224_s11]] }
  0x48   : > { %v185_v17 = vadd.f32 %v184_v10, %v180_v12  ;;  %v198_v18 = vmul.f32 %v362_v2, %v197_v16  ;;  %v202_v19 = vstv %s201_s12 }
  0x49   : > { %v203_v20 = vmul.f32 %v363_v3, %v202_v19  ;;  %v207_v21 = vstv %s206_s3 }
  0x4a   : > { %v190_v22 = vadd.f32 %v189_v13, %v185_v17  ;;  %v199_v23 = vadd.f32 %v198_v18, %v194_v15  ;;  %v208_v24 = vmul.f32 %v364_v5, %v207_v21  ;;  %v212_v25 = vstv %s211_s27 }
  0x4b   : > { %v213_v26 = vmul.f32 %v212_v25, %v165_v1  ;;  %v216_v27 = vstv %s215_s1 }
  0x4c   : > { %v204_v28 = vadd.f32 %v203_v20, %v199_v23  ;;  %v217_v29 = vmul.f32 %v362_v2, %v216_v27  ;;  %v221_v30 = vstv %s220_s26  ;;  %v230_v36 = vmul.f32 %v190_v22, %v190_v22 }
  0x4d   : > { %v222_v31 = vmul.f32 %v363_v3, %v221_v30  ;;  %v226_v32 = vstv %s225_s16 }
  0x4e   : > { %v209_v33 = vadd.f32 %v208_v24, %v204_v28  ;;  %v218_v34 = vadd.f32 %v217_v29, %v213_v26  ;;  %v227_v35 = vmul.f32 %v364_v5, %v226_v32 }
  0x50   : > { %v223_v37 = vadd.f32 %v222_v31, %v218_v34  ;;  %v231_v38 = vmul.f32 %v209_v33, %v209_v33 }
  0x52   : > { %v228_v39 = vadd.f32 %v227_v35, %v223_v37  ;;  %v232_v40 = vadd.f32 %v231_v38, %v230_v36 }
  0x54   : > { %v233_v41 = vmul.f32 %v228_v39, %v228_v39 }
  0x56   : > { %v234_v42 = vadd.f32 %v233_v41, %v232_v40 }
  0x58   : > { %477 = vrsqrt.f32 %v234_v42  ;;  %vm242_vm0 = vcmp.eq.f32.partialorder %v234_v42, inf  ;;  %v245_v49 = vand.u32 2147483648, %v234_v42  ;;  %vm244_vm1 = vcmp.eq.f32.partialorder %v234_v42, 0.0 }
  0x5e   : > { %v478_v43 = vpop.eup %477 }
  0x5f   : > { %v236_v44 = vmul.f32 %v478_v43, %v234_v42 }
  0x61   : > { %v237_v45 = vmul.f32 %v478_v43, %v236_v44 }
  0x63   : > { %v238_v46 = vmul.f32 0.5, %v237_v45 }
  0x65   : > { %v239_v47 = vsub.f32 1.5, %v238_v46 }
  0x67   : > { %v240_v48 = vmul.f32 %v478_v43, %v239_v47 }
  0x69   : > { %v241_v50 = vmul.f32 %v240_v48, %v234_v42 }
  0x6b   : > { %v243_v52 = vsel %vm242_vm0, %v234_v42, %v241_v50  ;;  %252 = sbr.rel (%p366_p7) target bundleno = 132 (0x84), region = 36 }
  0x6c   : > { %v246_v53 = vsel %vm244_vm1, %v245_v49, %v243_v52 }
  0x6d   : > { %v247_v54 = vadd.f32 %v246_v53, %v229_v51 }
  0x6f   : > { %248 = vst [vmem:[#allocation2] sm:$0xff] %v247_v54 }
  0x76   : > { %v253_v55 = vld [vmem:[#allocation2] sm:$0xff] }
  0x77   : > { %v254_v56 = vrot.slane %v253_v55, 4 }
  0x79   : > { %v255_v57 = vadd.f32 %v254_v56, %v253_v55 }
  0x7b   : > { %v256_v58 = vrot.slane %v255_v57, 2 }
  0x7d   : > { %v257_v59 = vadd.f32 %v256_v58, %v255_v57 }
  0x7f   : > { %v258_v60 = vrot.slane %v257_v59, 1 }
  0x81   : > { %v259_v61 = vadd.f32 %v258_v60, %v257_v59 }
  0x83   : > { %260 = vst [vmem:[%s787_s0] sm:$0x1] %v259_v61 }
  0x84 PF: > { %s270_s25 = scalar_lea.hbm %s863_s2, %s633_s19  ;;  %s272_s18 = sshll.u32 %s787_s0, 4  ;;  %s273_s18 = int_to_ptr.vmem [resolvable:$true] %s272_s18 }
  0x85   : > { %s274_s8 = sshll.u32 %s270_s25, 4  ;;  %s878_s28 = sand.u32 1, %s609_s14   ;;  %s275_s8 = int_to_ptr.hbm [resolvable:$true] %s274_s8 }
  0x86   : > { %s262_s30 = scalar_lea.sflag [#allocation7], %s878_s28  ;;  %s535_s24 = sshra.s32 %s275_s8, 4  ;;  %s536_s24 = int_to_ptr.hbm [resolvable:$true] %s535_s24 }
  0x87   : > { %s537_s29 = scalar_lea.hbm %s536_s24, 1  ;;  %s541_s23 = scalar_lea.hbm %s863_s2, 2 }
  0x88   : > { %p538_p9 = scmp.ne.s32.totalorder %s536_s24, %s537_s29  ;;  %p542_p13 = scmp.lt.s32.totalorder %s536_s24, %s863_s2 }
  0x89   : > { %p543_p0 = scmp.lt.s32.totalorder %s541_s23, %s537_s29 }
  0x8a   : > { %p539_p10 = pnand %p538_p9, %p752_p12 }
  0x8b   : > { %p544_p1 = por %p543_p0, %p542_p13 }
  0x8c   : > { %p540_p11 = pneg %p539_p10 }
  0x8e   : > { %p545_p4 = pnand %p544_p1, %p540_p11 }
  0x90   : > { %548 = shalt.err (!%p545_p4)
}
  0x91   : > { %372 = dma.vmem_to_hbm [thread:$0]  (%p752_p12), %s273_s18, 16, %s275_s8, %s262_s30  }
  0x92 PF: > { %p383_p5 = scmp.ge.s32.totalorder %s645_s22, 2  ;;  %s286_s19 = sand.u32 1, %s605_s13  }
  0x93   : > { %s287_s0 = scalar_lea.sflag [#allocation7], %s286_s19 }
  0x94   : > { %p379_p6 = pnand %p383_p5, %p765_p2 }
  0x96   : > { %p380_p8 = pneg %p379_p6 }
  0x98   : > { %600 = dma.done.wait (%p380_p8), %s287_s0, 16  }
  0x99   : > { %602 = vsyncadd (%p380_p8), %s287_s0, 4294967280  ;;  %s26_s22 = sadd.s32 1, %s645_s22   ;;  %s879_s6 = sld [smem:[#allocation12_spill]] }
  0x9a   : > { %p23_p3 = scmp.ge.s32.totalorder %s26_s22, 8   ;;  %s880_s0 = sld [smem:[#allocation15_spill]] }
  0x9b   : > { %s881_s5 = sld [smem:[#allocation13_spill]]  ;;  %s883_s13 = smov %s609_s14 }
  0x9c   : > { %s882_s26 = sld [smem:[#allocation14_spill]]  ;;  %s884_s14 = smov %s613_s15 }
  0x9d   : > { %s885_s15 = smov %s757_s7  ;;  %s886_s16 = smov %s621_s17 }
  0x9e   : > { %s888_s18 = smov %s637_s20  ;;  %s889_s19 = smov %s641_s21 }
  0x9f   : > { %s887_s17 = smov %s879_s6  ;;  %25 = sbr.rel (!%p23_p3) target bundleno = 15 (0xf), region = 80 }
  0xa1   : > { %s890_s20 = smov %s881_s5 }
  0xa2   : > { %s891_s21 = smov %s882_s26 }
  0xa4   :  { %292 = vsyncpa [#allocation6], 1 }
  0xa5   :  { %294 = vsyncpa [#allocation6 + $0x1], 1 }
  0xa6   :  { %295 = vsyncpa [#allocation7], 1 }
  0xa7   :  { %297 = vsyncpa [#allocation7 + $0x1], 1 }

</bundles_post_ra>
